<compile_context>
chip_gen: v7x
topology: tpu7x:2x2x1
jax: 0.10.0
libtpu: 0.0.40
codegen_flags: <defaults>
</compile_context>

<pallas_src>
import jax
import jax.numpy as jnp
from jax.experimental import pallas as pl
from jax.experimental.pallas import tpu as pltpu

_EPS = 1e-5


def _grouped_bn(x, pool, pool_t, gamma, beta, n):
    """Train-mode BatchNorm1d(G) on x:(B, G*E), columns ordered (group g, emb e).

    One-pass stats (sum / sum-of-squares -> biased var); the per-group reduction
    and the broadcast back to (G*E) columns are 0/1 pooling matmuls on the MXU.
    """
    s1 = jnp.sum(x, axis=0, keepdims=True)                              # (1, G*E)
    s2 = jnp.sum(x * x, axis=0, keepdims=True)                          # (1, G*E)
    gsum = jnp.dot(s1, pool, preferred_element_type=jnp.float32)        # (1, G)
    gsq = jnp.dot(s2, pool, preferred_element_type=jnp.float32)         # (1, G)
    inv_n = 1.0 / n
    mean = gsum * inv_n
    var = gsq * inv_n - mean * mean                                     # biased variance
    scale = gamma * jax.lax.rsqrt(var + _EPS)                           # (1, G)
    shift = beta - mean * scale                                         # (1, G)
    sc = jnp.dot(scale, pool_t, preferred_element_type=jnp.float32)     # (1, G*E)
    sh = jnp.dot(shift, pool_t, preferred_element_type=jnp.float32)     # (1, G*E)
    return x * sc + sh


def _afn_fused_kernel(xr_ref, pool_f_ref, pool_ft_ref, g_emb_ref, b_emb_ref,
                      w_lnn_big_ref, b_lnn_big_ref, pool_h_ref, pool_ht_ref,
                      g_afn_ref, b_afn_ref, w1t_ref, b1_ref, g1_ref, be1_ref,
                      w2t_ref, b2_ref, y_ref):
    B, FE = xr_ref.shape
    F = pool_f_ref.shape[1]
    E = FE // F
    n_be = float(B * E)
    mm = w_lnn_big_ref.dtype          # bf16 or f32 MXU operands; accumulation is f32

    # log + emb_bn == BatchNorm1d(nfield): per-field stats over (batch, emb-dim)
    x_log = jnp.log(xr_ref[...])                                        # (B, F*E)
    x_bn = _grouped_bn(x_log, pool_f_ref[...], pool_ft_ref[...],
                       g_emb_ref[...], b_emb_ref[...], n_be)

    # Logarithmic neural layer: Linear(nfield -> afn_hid) along the field axis,
    # done as ONE lane-dense matmul with the Kronecker-expanded weight; then exp.
    z = jnp.dot(x_bn.astype(mm), w_lnn_big_ref[...],
                preferred_element_type=jnp.float32) + b_lnn_big_ref[...]  # (B, H*E)
    z = jnp.exp(z)

    # afn_bn == BatchNorm1d(afn_hid): per-log-neuron stats over (batch, emb-dim)
    z_bn = _grouped_bn(z, pool_h_ref[...], pool_ht_ref[...],
                       g_afn_ref[...], b_afn_ref[...], n_be)

    # MLP head: Linear(H*E -> hid) -> BatchNorm1d(hid) -> ReLU -> Linear(hid -> 1)
    a = jnp.dot(z_bn.astype(mm), w1t_ref[...],
                preferred_element_type=jnp.float32) + b1_ref[...]         # (B, HID)
    mu = jnp.mean(a, axis=0, keepdims=True)
    var = jnp.mean((a - mu) * (a - mu), axis=0, keepdims=True)
    a = (a - mu) * jax.lax.rsqrt(var + _EPS) * g1_ref[...] + be1_ref[...]
    a = jnp.maximum(a, 0.0)                                               # ReLU; dropout p=0
    y_ref[...] = jnp.dot(a.astype(mm), w2t_ref[...],
                         preferred_element_type=jnp.float32) + b2_ref[...]  # (B, 1)


def prepare_params(params, mm_dtype=jnp.float32):
    """Hoisted, one-time parameter transforms (clamp, Kronecker weight, transposes)."""
    F = params["g_emb"].shape[0]
    H = params["w_lnn"].shape[0]
    E = params["emb"].shape[1]
    HID = params["w1"].shape[0]

    eye_e = jnp.eye(E, dtype=jnp.float32)
    # w_big[(f,e), (h,e')] = w_lnn[h, f] * delta(e, e')  -> (F*E, H*E)
    w_big = (params["w_lnn"].T[:, None, :, None] * eye_e[None, :, None, :]
             ).reshape(F * E, H * E)
    pool_f = jnp.repeat(jnp.eye(F, dtype=jnp.float32), E, axis=0)         # (F*E, F)
    pool_h = jnp.repeat(jnp.eye(H, dtype=jnp.float32), E, axis=0)         # (H*E, H)

    return dict(
        emb_clip=jnp.maximum(jnp.abs(params["emb"]), 1e-4).astype(jnp.float32),
        pool_f=pool_f, pool_ft=pool_f.T,
        g_emb=params["g_emb"].reshape(1, F).astype(jnp.float32),
        b_emb=params["b_emb"].reshape(1, F).astype(jnp.float32),
        w_lnn_big=w_big.astype(mm_dtype),
        b_lnn_big=jnp.repeat(params["b_lnn"], E).reshape(1, H * E).astype(jnp.float32),
        pool_h=pool_h, pool_ht=pool_h.T,
        g_afn=params["g_afn"].reshape(1, H).astype(jnp.float32),
        b_afn=params["b_afn"].reshape(1, H).astype(jnp.float32),
        w1t=params["w1"].T.astype(mm_dtype),                               # (H*E, HID)
        b1=params["b1"].reshape(1, HID).astype(jnp.float32),
        g1=params["g1"].reshape(1, HID).astype(jnp.float32),
        be1=params["be1"].reshape(1, HID).astype(jnp.float32),
        w2t=params["w2"].T.astype(mm_dtype),                               # (HID, 1)
        b2=params["b2"].reshape(1, 1).astype(jnp.float32),
    )


def afn_forward(prep, x_id, x_value):
    B, F = x_id.shape
    E = prep["emb_clip"].shape[1]

    # Embedding gather (+ value multiply) stays in XLA; the reshape to (B, F*E)
    # is free (row-major contiguous) — no transpose pass anymore.
    x_emb = prep["emb_clip"][x_id] * x_value[:, :, None]                   # (B, F, E)
    xr = x_emb.reshape(B, F * E).astype(jnp.float32)                       # columns (f, e)

    inputs = (xr, prep["pool_f"], prep["pool_ft"], prep["g_emb"], prep["b_emb"],
              prep["w_lnn_big"], prep["b_lnn_big"], prep["pool_h"], prep["pool_ht"],
              prep["g_afn"], prep["b_afn"], prep["w1t"], prep["b1"], prep["g1"],
              prep["be1"], prep["w2t"], prep["b2"])

    y = pl.pallas_call(
        _afn_fused_kernel,
        out_shape=jax.ShapeDtypeStruct((B, 1), jnp.float32),
        in_specs=[pl.BlockSpec(memory_space=pltpu.MemorySpace.VMEM)] * len(inputs),
        out_specs=pl.BlockSpec(memory_space=pltpu.MemorySpace.VMEM),
        compiler_params=pltpu.CompilerParams(vmem_limit_bytes=32 * 1024 * 1024),
    )(*inputs)

    return y[:, 0]                                                         # .squeeze(1) -> (B,)


def afn_reference(params, x_id, x_value):
    """Pure-JAX reference mirroring the PyTorch layout / two-pass BN exactly."""
    def bn(x, g, b, axes):
        mu = jnp.mean(x, axis=axes, keepdims=True)
        var = jnp.mean((x - mu) ** 2, axis=axes, keepdims=True)
        return (x - mu) * jax.lax.rsqrt(var + _EPS) * g + b

    emb_w = jnp.maximum(jnp.abs(params["emb"]), 1e-4)
    x_emb = emb_w[x_id] * x_value[:, :, None]                              # (B, F, E)
    x_log = jnp.log(x_emb)
    x_bn = bn(x_log, params["g_emb"][None, :, None], params["b_emb"][None, :, None], (0, 2))
    x_afn = jnp.einsum("bfe,hf->beh", x_bn, params["w_lnn"]) + params["b_lnn"]  # (B, E, H)
    x_afn = jnp.transpose(jnp.exp(x_afn), (0, 2, 1))                       # (B, H, E)
    x_afn = bn(x_afn, params["g_afn"][None, :, None], params["b_afn"][None, :, None], (0, 2))
    flat = x_afn.reshape(x_afn.shape[0], -1)                               # (B, H*E)
    a = flat @ params["w1"].T + params["b1"]
    a = bn(a, params["g1"][None, :], params["be1"][None, :], (0,))
    a = jnp.maximum(a, 0.0)
    y = a @ params["w2"].T + params["b2"]
    return y[:, 0]


if __name__ == "__main__":
    # small shapes consistent with the module
    B, nfield, nfeat, nemb = 2, 4, 32, 8
    afn_hid, hid_size, output_size = 16, 32, 1

    key = jax.random.PRNGKey(0)
    ks = jax.random.split(key, 12)
    params = {
        "emb":   jax.random.uniform(ks[0], (nfeat, nemb), jnp.float32, 0.1, 1.0),
        "g_emb": 1.0 + 0.1 * jax.random.normal(ks[1], (nfield,), jnp.float32),
        "b_emb": 0.1 * jax.random.normal(ks[2], (nfield,), jnp.float32),
        "w_lnn": 0.3 * jax.random.normal(ks[3], (afn_hid, nfield), jnp.float32),
        "b_lnn": 0.1 * jax.random.normal(ks[4], (afn_hid,), jnp.float32),
        "g_afn": 1.0 + 0.1 * jax.random.normal(ks[5], (afn_hid,), jnp.float32),
        "b_afn": 0.1 * jax.random.normal(ks[6], (afn_hid,), jnp.float32),
        "w1":    0.1 * jax.random.normal(ks[7], (hid_size, afn_hid * nemb), jnp.float32),
        "b1":    0.1 * jax.random.normal(ks[8], (hid_size,), jnp.float32),
        "g1":    1.0 + 0.1 * jax.random.normal(ks[9], (hid_size,), jnp.float32),
        "be1":   0.1 * jax.random.normal(ks[10], (hid_size,), jnp.float32),
        "w2":    0.1 * jax.random.normal(ks[11], (output_size, hid_size), jnp.float32),
        "b2":    jnp.zeros((output_size,), jnp.float32),
    }

    kx, kv = jax.random.split(jax.random.PRNGKey(1))
    x_id = jax.random.randint(kx, (B, nfield), 0, nfeat, dtype=jnp.int32)
    x_value = jax.random.uniform(kv, (B, nfield), jnp.float32, 0.5, 1.5)

    fwd = jax.jit(afn_forward)

    # f32 MXU operands: tight check against the PyTorch-style reference
    prep_f32 = prepare_params(params, mm_dtype=jnp.float32)
    y = jax.block_until_ready(fwd(prep_f32, x_id, x_value))
    y_ref = jax.block_until_ready(afn_reference(params, x_id, x_value))
    assert y.shape == (B,), y.shape
    assert jnp.all(jnp.isfinite(y))
    assert jnp.allclose(y, y_ref, atol=1e-3, rtol=1e-3), (y, y_ref)

    # bf16 MXU operands (v6e/v7x fast path): sanity run only — train-mode BN over a
    # 2-row batch is sign-sensitive, so no tight numeric check at this toy size.
    prep_bf16 = prepare_params(params, mm_dtype=jnp.bfloat16)
    y_bf16 = jax.block_until_ready(fwd(prep_bf16, x_id, x_value))
    assert y_bf16.shape == (B,)
    assert jnp.all(jnp.isfinite(y_bf16))

    print("KERNEL_OK")
</pallas_src>

<mosaic_0001>
module attributes {stable_mosaic.version = 11 : i64} {
  func.func @_afn_fused_kernel(%arg0: memref<2x32xf32, #tpu.memory_space<vmem>>, %arg1: memref<32x4xf32, #tpu.memory_space<vmem>>, %arg2: memref<4x32xf32, #tpu.memory_space<vmem>>, %arg3: memref<1x4xf32, #tpu.memory_space<vmem>>, %arg4: memref<1x4xf32, #tpu.memory_space<vmem>>, %arg5: memref<32x128xf32, #tpu.memory_space<vmem>>, %arg6: memref<1x128xf32, #tpu.memory_space<vmem>>, %arg7: memref<128x16xf32, #tpu.memory_space<vmem>>, %arg8: memref<16x128xf32, #tpu.memory_space<vmem>>, %arg9: memref<1x16xf32, #tpu.memory_space<vmem>>, %arg10: memref<1x16xf32, #tpu.memory_space<vmem>>, %arg11: memref<128x32xf32, #tpu.memory_space<vmem>>, %arg12: memref<1x32xf32, #tpu.memory_space<vmem>>, %arg13: memref<1x32xf32, #tpu.memory_space<vmem>>, %arg14: memref<1x32xf32, #tpu.memory_space<vmem>>, %arg15: memref<32x1xf32, #tpu.memory_space<vmem>>, %arg16: memref<1x1xf32, #tpu.memory_space<vmem>>, %arg17: memref<2x1xf32, #tpu.memory_space<vmem>>) attributes {dimension_semantics = [], scalar_prefetch = 0 : i64, scratch_operands = 0 : i64, tpu.core_type = #tpu.core_type<tc>} {
    %c0 = arith.constant 0 : index
    %c0_0 = arith.constant 0 : index
    %0 = vector.load %arg0[%c0, %c0_0] : memref<2x32xf32, #tpu.memory_space<vmem>>, vector<2x32xf32>
    %1 = math.log %0 : vector<2x32xf32>
    %c0_1 = arith.constant 0 : index
    %c0_2 = arith.constant 0 : index
    %2 = vector.load %arg1[%c0_1, %c0_2] : memref<32x4xf32, #tpu.memory_space<vmem>>, vector<32x4xf32>
    %c0_3 = arith.constant 0 : index
    %c0_4 = arith.constant 0 : index
    %3 = vector.load %arg2[%c0_3, %c0_4] : memref<4x32xf32, #tpu.memory_space<vmem>>, vector<4x32xf32>
    %c0_5 = arith.constant 0 : index
    %c0_6 = arith.constant 0 : index
    %4 = vector.load %arg3[%c0_5, %c0_6] : memref<1x4xf32, #tpu.memory_space<vmem>>, vector<1x4xf32>
    %c0_7 = arith.constant 0 : index
    %c0_8 = arith.constant 0 : index
    %5 = vector.load %arg4[%c0_7, %c0_8] : memref<1x4xf32, #tpu.memory_space<vmem>>, vector<1x4xf32>
    %cst = arith.constant dense<0.000000e+00> : vector<32xf32>
    %6 = vector.multi_reduction <add>, %1, %cst [0] : vector<2x32xf32> to vector<32xf32>
    %7 = vector.shape_cast %6 : vector<32xf32> to vector<1x32xf32>
    %8 = arith.mulf %1, %1 : vector<2x32xf32>
    %cst_9 = arith.constant dense<0.000000e+00> : vector<32xf32>
    %9 = vector.multi_reduction <add>, %8, %cst_9 [0] : vector<2x32xf32> to vector<32xf32>
    %10 = vector.shape_cast %9 : vector<32xf32> to vector<1x32xf32>
    %cst_10 = arith.constant dense<0.000000e+00> : vector<1x4xf32>
    %11 = tpu.matmul %7, %2, %cst_10 {dimension_numbers = #tpu.dot_dimension_numbers<[1], [0], [0], [1], [0, 0, 1, 1], [], []>} : vector<1x32xf32>, vector<32x4xf32>, vector<1x4xf32> -> vector<1x4xf32>
    %cst_11 = arith.constant dense<0.000000e+00> : vector<1x4xf32>
    %12 = tpu.matmul %10, %2, %cst_11 {dimension_numbers = #tpu.dot_dimension_numbers<[1], [0], [0], [1], [0, 0, 1, 1], [], []>} : vector<1x32xf32>, vector<32x4xf32>, vector<1x4xf32> -> vector<1x4xf32>
    %cst_12 = arith.constant 6.250000e-02 : f32
    %13 = vector.broadcast %cst_12 : f32 to vector<1x4xf32>
    %14 = arith.mulf %11, %13 : vector<1x4xf32>
    %cst_13 = arith.constant 6.250000e-02 : f32
    %15 = vector.broadcast %cst_13 : f32 to vector<1x4xf32>
    %16 = arith.mulf %12, %15 : vector<1x4xf32>
    %17 = arith.mulf %14, %14 : vector<1x4xf32>
    %18 = arith.subf %16, %17 : vector<1x4xf32>
    %cst_14 = arith.constant 9.99999974E-6 : f32
    %19 = vector.broadcast %cst_14 : f32 to vector<1x4xf32>
    %20 = arith.addf %18, %19 : vector<1x4xf32>
    %21 = math.rsqrt %20 : vector<1x4xf32>
    %22 = arith.mulf %4, %21 : vector<1x4xf32>
    %23 = arith.mulf %14, %22 : vector<1x4xf32>
    %24 = arith.subf %5, %23 : vector<1x4xf32>
    %cst_15 = arith.constant dense<0.000000e+00> : vector<1x32xf32>
    %25 = tpu.matmul %22, %3, %cst_15 {dimension_numbers = #tpu.dot_dimension_numbers<[1], [0], [0], [1], [0, 0, 1, 1], [], []>} : vector<1x4xf32>, vector<4x32xf32>, vector<1x32xf32> -> vector<1x32xf32>
    %cst_16 = arith.constant dense<0.000000e+00> : vector<1x32xf32>
    %26 = tpu.matmul %24, %3, %cst_16 {dimension_numbers = #tpu.dot_dimension_numbers<[1], [0], [0], [1], [0, 0, 1, 1], [], []>} : vector<1x4xf32>, vector<4x32xf32>, vector<1x32xf32> -> vector<1x32xf32>
    %27 = vector.broadcast %25 : vector<1x32xf32> to vector<2x32xf32>
    %28 = arith.mulf %1, %27 : vector<2x32xf32>
    %29 = vector.broadcast %26 : vector<1x32xf32> to vector<2x32xf32>
    %30 = arith.addf %28, %29 : vector<2x32xf32>
    %c0_17 = arith.constant 0 : index
    %c0_18 = arith.constant 0 : index
    %31 = vector.load %arg5[%c0_17, %c0_18] : memref<32x128xf32, #tpu.memory_space<vmem>>, vector<32x128xf32>
    %cst_19 = arith.constant dense<0.000000e+00> : vector<2x128xf32>
    %32 = tpu.matmul %30, %31, %cst_19 {dimension_numbers = #tpu.dot_dimension_numbers<[1], [0], [0], [1], [0, 0, 1, 1], [], []>} : vector<2x32xf32>, vector<32x128xf32>, vector<2x128xf32> -> vector<2x128xf32>
    %c0_20 = arith.constant 0 : index
    %c0_21 = arith.constant 0 : index
    %33 = vector.load %arg6[%c0_20, %c0_21] : memref<1x128xf32, #tpu.memory_space<vmem>>, vector<1x128xf32>
    %34 = vector.broadcast %33 : vector<1x128xf32> to vector<2x128xf32>
    %35 = arith.addf %32, %34 : vector<2x128xf32>
    %36 = math.exp %35 : vector<2x128xf32>
    %c0_22 = arith.constant 0 : index
    %c0_23 = arith.constant 0 : index
    %37 = vector.load %arg7[%c0_22, %c0_23] : memref<128x16xf32, #tpu.memory_space<vmem>>, vector<128x16xf32>
    %c0_24 = arith.constant 0 : index
    %c0_25 = arith.constant 0 : index
    %38 = vector.load %arg8[%c0_24, %c0_25] : memref<16x128xf32, #tpu.memory_space<vmem>>, vector<16x128xf32>
    %c0_26 = arith.constant 0 : index
    %c0_27 = arith.constant 0 : index
    %39 = vector.load %arg9[%c0_26, %c0_27] : memref<1x16xf32, #tpu.memory_space<vmem>>, vector<1x16xf32>
    %c0_28 = arith.constant 0 : index
    %c0_29 = arith.constant 0 : index
    %40 = vector.load %arg10[%c0_28, %c0_29] : memref<1x16xf32, #tpu.memory_space<vmem>>, vector<1x16xf32>
    %cst_30 = arith.constant dense<0.000000e+00> : vector<128xf32>
    %41 = vector.multi_reduction <add>, %36, %cst_30 [0] : vector<2x128xf32> to vector<128xf32>
    %42 = vector.shape_cast %41 : vector<128xf32> to vector<1x128xf32>
    %43 = arith.mulf %36, %36 : vector<2x128xf32>
    %cst_31 = arith.constant dense<0.000000e+00> : vector<128xf32>
    %44 = vector.multi_reduction <add>, %43, %cst_31 [0] : vector<2x128xf32> to vector<128xf32>
    %45 = vector.shape_cast %44 : vector<128xf32> to vector<1x128xf32>
    %cst_32 = arith.constant dense<0.000000e+00> : vector<1x16xf32>
    %46 = tpu.matmul %42, %37, %cst_32 {dimension_numbers = #tpu.dot_dimension_numbers<[1], [0], [0], [1], [0, 0, 1, 1], [], []>} : vector<1x128xf32>, vector<128x16xf32>, vector<1x16xf32> -> vector<1x16xf32>
    %cst_33 = arith.constant dense<0.000000e+00> : vector<1x16xf32>
    %47 = tpu.matmul %45, %37, %cst_33 {dimension_numbers = #tpu.dot_dimension_numbers<[1], [0], [0], [1], [0, 0, 1, 1], [], []>} : vector<1x128xf32>, vector<128x16xf32>, vector<1x16xf32> -> vector<1x16xf32>
    %cst_34 = arith.constant 6.250000e-02 : f32
    %48 = vector.broadcast %cst_34 : f32 to vector<1x16xf32>
    %49 = arith.mulf %46, %48 : vector<1x16xf32>
    %cst_35 = arith.constant 6.250000e-02 : f32
    %50 = vector.broadcast %cst_35 : f32 to vector<1x16xf32>
    %51 = arith.mulf %47, %50 : vector<1x16xf32>
    %52 = arith.mulf %49, %49 : vector<1x16xf32>
    %53 = arith.subf %51, %52 : vector<1x16xf32>
    %cst_36 = arith.constant 9.99999974E-6 : f32
    %54 = vector.broadcast %cst_36 : f32 to vector<1x16xf32>
    %55 = arith.addf %53, %54 : vector<1x16xf32>
    %56 = math.rsqrt %55 : vector<1x16xf32>
    %57 = arith.mulf %39, %56 : vector<1x16xf32>
    %58 = arith.mulf %49, %57 : vector<1x16xf32>
    %59 = arith.subf %40, %58 : vector<1x16xf32>
    %cst_37 = arith.constant dense<0.000000e+00> : vector<1x128xf32>
    %60 = tpu.matmul %57, %38, %cst_37 {dimension_numbers = #tpu.dot_dimension_numbers<[1], [0], [0], [1], [0, 0, 1, 1], [], []>} : vector<1x16xf32>, vector<16x128xf32>, vector<1x128xf32> -> vector<1x128xf32>
    %cst_38 = arith.constant dense<0.000000e+00> : vector<1x128xf32>
    %61 = tpu.matmul %59, %38, %cst_38 {dimension_numbers = #tpu.dot_dimension_numbers<[1], [0], [0], [1], [0, 0, 1, 1], [], []>} : vector<1x16xf32>, vector<16x128xf32>, vector<1x128xf32> -> vector<1x128xf32>
    %62 = vector.broadcast %60 : vector<1x128xf32> to vector<2x128xf32>
    %63 = arith.mulf %36, %62 : vector<2x128xf32>
    %64 = vector.broadcast %61 : vector<1x128xf32> to vector<2x128xf32>
    %65 = arith.addf %63, %64 : vector<2x128xf32>
    %c0_39 = arith.constant 0 : index
    %c0_40 = arith.constant 0 : index
    %66 = vector.load %arg11[%c0_39, %c0_40] : memref<128x32xf32, #tpu.memory_space<vmem>>, vector<128x32xf32>
    %cst_41 = arith.constant dense<0.000000e+00> : vector<2x32xf32>
    %67 = tpu.matmul %65, %66, %cst_41 {dimension_numbers = #tpu.dot_dimension_numbers<[1], [0], [0], [1], [0, 0, 1, 1], [], []>} : vector<2x128xf32>, vector<128x32xf32>, vector<2x32xf32> -> vector<2x32xf32>
    %c0_42 = arith.constant 0 : index
    %c0_43 = arith.constant 0 : index
    %68 = vector.load %arg12[%c0_42, %c0_43] : memref<1x32xf32, #tpu.memory_space<vmem>>, vector<1x32xf32>
    %69 = vector.broadcast %68 : vector<1x32xf32> to vector<2x32xf32>
    %70 = arith.addf %67, %69 : vector<2x32xf32>
    %cst_44 = arith.constant dense<0.000000e+00> : vector<32xf32>
    %71 = vector.multi_reduction <add>, %70, %cst_44 [0] : vector<2x32xf32> to vector<32xf32>
    %72 = vector.shape_cast %71 : vector<32xf32> to vector<1x32xf32>
    %cst_45 = arith.constant 2.000000e+00 : f32
    %73 = vector.broadcast %cst_45 : f32 to vector<1x32xf32>
    %74 = arith.divf %72, %73 : vector<1x32xf32>
    %75 = vector.broadcast %74 : vector<1x32xf32> to vector<2x32xf32>
    %76 = arith.subf %70, %75 : vector<2x32xf32>
    %77 = vector.broadcast %74 : vector<1x32xf32> to vector<2x32xf32>
    %78 = arith.subf %70, %77 : vector<2x32xf32>
    %79 = arith.mulf %76, %78 : vector<2x32xf32>
    %cst_46 = arith.constant dense<0.000000e+00> : vector<32xf32>
    %80 = vector.multi_reduction <add>, %79, %cst_46 [0] : vector<2x32xf32> to vector<32xf32>
    %81 = vector.shape_cast %80 : vector<32xf32> to vector<1x32xf32>
    %cst_47 = arith.constant 2.000000e+00 : f32
    %82 = vector.broadcast %cst_47 : f32 to vector<1x32xf32>
    %83 = arith.divf %81, %82 : vector<1x32xf32>
    %84 = vector.broadcast %74 : vector<1x32xf32> to vector<2x32xf32>
    %85 = arith.subf %70, %84 : vector<2x32xf32>
    %cst_48 = arith.constant 9.99999974E-6 : f32
    %86 = vector.broadcast %cst_48 : f32 to vector<1x32xf32>
    %87 = arith.addf %83, %86 : vector<1x32xf32>
    %88 = math.rsqrt %87 : vector<1x32xf32>
    %89 = vector.broadcast %88 : vector<1x32xf32> to vector<2x32xf32>
    %90 = arith.mulf %85, %89 : vector<2x32xf32>
    %c0_49 = arith.constant 0 : index
    %c0_50 = arith.constant 0 : index
    %91 = vector.load %arg13[%c0_49, %c0_50] : memref<1x32xf32, #tpu.memory_space<vmem>>, vector<1x32xf32>
    %92 = vector.broadcast %91 : vector<1x32xf32> to vector<2x32xf32>
    %93 = arith.mulf %90, %92 : vector<2x32xf32>
    %c0_51 = arith.constant 0 : index
    %c0_52 = arith.constant 0 : index
    %94 = vector.load %arg14[%c0_51, %c0_52] : memref<1x32xf32, #tpu.memory_space<vmem>>, vector<1x32xf32>
    %95 = vector.broadcast %94 : vector<1x32xf32> to vector<2x32xf32>
    %96 = arith.addf %93, %95 : vector<2x32xf32>
    %cst_53 = arith.constant 0.000000e+00 : f32
    %97 = vector.broadcast %cst_53 : f32 to vector<2x32xf32>
    %98 = arith.maximumf %96, %97 : vector<2x32xf32>
    %c0_54 = arith.constant 0 : index
    %c0_55 = arith.constant 0 : index
    %99 = vector.load %arg15[%c0_54, %c0_55] : memref<32x1xf32, #tpu.memory_space<vmem>>, vector<32x1xf32>
    %cst_56 = arith.constant dense<0.000000e+00> : vector<2x1xf32>
    %100 = tpu.matmul %98, %99, %cst_56 {dimension_numbers = #tpu.dot_dimension_numbers<[1], [0], [0], [1], [0, 0, 1, 1], [], []>} : vector<2x32xf32>, vector<32x1xf32>, vector<2x1xf32> -> vector<2x1xf32>
    %c0_57 = arith.constant 0 : index
    %c0_58 = arith.constant 0 : index
    %101 = vector.load %arg16[%c0_57, %c0_58] : memref<1x1xf32, #tpu.memory_space<vmem>>, vector<1x1xf32>
    %102 = vector.broadcast %101 : vector<1x1xf32> to vector<2x1xf32>
    %103 = arith.addf %100, %102 : vector<2x1xf32>
    %c0_59 = arith.constant 0 : index
    %c0_60 = arith.constant 0 : index
    %104 = vector.load %arg17[%c0_59, %c0_60] : memref<2x1xf32, #tpu.memory_space<vmem>>, vector<2x1xf32>
    tpu.vector_store %arg17[%c0_59, %c0_60], %103 {strides = array<i32>} : memref<2x1xf32, #tpu.memory_space<vmem>>, vector<2x1xf32>,
    return
  }
}

</mosaic_0001>

<bundles_post_ra>
// kernel: afn_forward.1
= control target key start
LH: loop header
LB: loop body
LE: loop exit
PB: predicated region body
PF: predicated region fallthrough
CT: control target
= control target key end

     0   :  { %v1435_v0 = vmov 0.0|0.0   ;;  %vm1436_vm0 = vmmov 0   ;;  %v1437_v4 = vmov 0.0   ;;  %vm68_vm1 = vcmask 254976   ;;  %s1788_s1 = inlined_call_operand.vmem [shape: f32[32,4], index: 1, kind: input, shape index: {}]   ;;  %s1789_s0 = inlined_call_operand.vmem [shape: f32[2,32], index: 0, kind: input, shape index: {}]   ;;  %s1790_s2 = inlined_call_operand.vmem [shape: f32[4,32], index: 2, kind: input, shape index: {}]   ;;  %s1791_s3 = inlined_call_operand.vmem [shape: f32[1,4], index: 3, kind: input, shape index: {}]   ;;  %s1792_s4 = inlined_call_operand.vmem [shape: f32[1,4], index: 4, kind: input, shape index: {}]   ;;  %s1793_s5 = inlined_call_operand.vmem [shape: f32[32,128], index: 5, kind: input, shape index: {}]   ;;  %s1794_s7 = inlined_call_operand.vmem [shape: f32[128,16], index: 7, kind: input, shape index: {}]   ;;  %s1795_s6 = inlined_call_operand.vmem [shape: f32[1,128], index: 6, kind: input, shape index: {}]   ;;  %s1796_s8 = inlined_call_operand.vmem [shape: f32[16,128], index: 8, kind: input, shape index: {}]   ;;  %s1797_s11 = inlined_call_operand.vmem [shape: f32[128,32], index: 11, kind: input, shape index: {}]   ;;  %s1798_s9 = inlined_call_operand.vmem [shape: f32[1,16], index: 9, kind: input, shape index: {}]   ;;  %s1799_s10 = inlined_call_operand.vmem [shape: f32[1,16], index: 10, kind: input, shape index: {}]   ;;  %s1800_s15 = inlined_call_operand.vmem [shape: f32[32,1], index: 15, kind: input, shape index: {}]   ;;  %s1801_s16 = inlined_call_operand.<no memory space> [shape: f32[1,1], index: 16, kind: input, shape index: {}]   ;;  %s1802_s12 = inlined_call_operand.vmem [shape: f32[1,32], index: 12, kind: input, shape index: {}]   ;;  %s1803_s13 = inlined_call_operand.vmem [shape: f32[1,32], index: 13, kind: input, shape index: {}]   ;;  %s1804_s14 = inlined_call_operand.vmem [shape: f32[1,32], index: 14, kind: input, shape index: {}]   ;;  %s1805_s17 = inlined_call_operand.vmem [shape: f32[2,1], index: 17, kind: output, shape index: {}]  }
   0x1   :  { %1807 = sst [smem:[#allocation3_spill]] %s1788_s1  ;;  %1320 = vmatprep.subr.bf16.mxu1 %v1435_v0  ;;  %1155 = vmatprep.mubr.msk.f32.mxu1 %vm1436_vm0, %v1437_v4  ;;  %vm84_vm2 = vcmask 261120   ;;  %vm244_vm3 = vcmask 1043456   ;;  %v65_v26 = vld [vmem:[%s1790_s2] sm:$0xf]  ;;  %vm240_vm4 = vcmask 31744   ;;  %v391_v51 = vlaneseq }
   0x2   :  { %1808 = sst [smem:[#allocation4_spill]] %s1789_s0  ;;  %s1809_s26 = sld [smem:[#allocation3_spill]]  ;;  %1332 = vmatprep.subr.bf16.mxu0 %v1435_v0  ;;  %1187 = vmatprep.mubr.msk.f32.mxu0 %vm1436_vm0, %v1437_v4  ;;  %v66_v36 = vld [vmem:[%s1791_s3] sm:$0x1]  ;;  %v402_v43 = vld [vmem:[%s1793_s5 + $0x8] sm:$0xff]  ;;  %v403_v45 = vld [vmem:[%s1793_s5 + $0x10] sm:$0xff] }
   0x3   :  { %s1810_s20 = sld [smem:[#allocation4_spill]]  ;;  %v67_v39 = vld [vmem:[%s1792_s4] sm:$0x1]  ;;  %v404_v46 = vld [vmem:[%s1793_s5 + $0x18] sm:$0xff]  ;;  %v488_v49 = vld [vmem:[%s1794_s7 + $0x8] sm:$0xff]  ;;  %v392_v52 = vshrl.u32 %v391_v51, 7 }
   0x4   :  { %v401_v42 = vld [vmem:[%s1793_s5] sm:$0xff]  ;;  %v1336_v47 = vpack.c.bf16 %v404_v46, %v403_v45  ;;  %v489_v62 = vld [vmem:[%s1794_s7 + $0x10] sm:$0xff]  ;;  %v490_v63 = vld [vmem:[%s1794_s7 + $0x18] sm:$0xff]  ;;  %vm507_vm5 = vcmask 1041408   ;;  %vm672_vm6 = vcmask 130048   ;;  %vm1045_vm7 = vcmask 1024  }
   0x5   :  { %v1333_v44 = vpack.c.bf16 %v402_v43, %v401_v42  ;;  %v487_v48 = vld [vmem:[%s1794_s7] sm:$0xff]  ;;  %v1604_v53 = vsub.s32 0, %v392_v52  ;;  %v504_v43 = vld [vmem:[%s1796_s8 + $0x8] sm:$0xff] }
   0x6   :  { %v1339_v50 = vpack.c.bf16 %v488_v49, %v487_v48  ;;  %v503_v42 = vld [vmem:[%s1796_s8] sm:$0xff]  ;;  %v830_v46 = vld [vmem:[%s1797_s11 + $0x8] sm:$0xff]  ;;  %v832_v49 = vld [vmem:[%s1797_s11 + $0x18] sm:$0xff] }
   0x7   :  { %1334 = vmatpush3.bf16.msra.mxu0 %v1333_v44  ;;  %v1387_v44 = vpack.c.bf16 %v504_v43, %v503_v42  ;;  %v829_v45 = vld [vmem:[%s1797_s11] sm:$0xff]  ;;  %v834_v52 = vld [vmem:[%s1797_s11 + $0x28] sm:$0xff] }
   0x8   :  { %v61_v1 = vld [vmem:[%s1809_s26] sm:$0xff]  ;;  %v62_v2 = vld [vmem:[%s1809_s26 + $0x8] sm:$0xff]  ;;  %v63_v3 = vld [vmem:[%s1809_s26 + $0x10] sm:$0xff]  ;;  %1335 = vmatprep.subr.bf16.mxu0 %v1435_v0  ;;  %v1393_v48 = vpack.c.bf16 %v830_v46, %v829_v45 }
   0x9   :  { %v1321_v5 = vpack.c.bf16 %v62_v2, %v61_v1  ;;  %v64_v6 = vld [vmem:[%s1809_s26 + $0x18] sm:$0xff]  ;;  %v58_v7 = vld [vmem:[%s1810_s20] sm:$0x3]  ;;  %v1342_v1 = vpack.c.bf16 %v490_v63, %v489_v62 }
   0xa   :  { %1425 = vlog2.f32 %v58_v7  ;;  %v1324_v8 = vpack.c.bf16 %v64_v6, %v63_v3  ;;  %v491_v2 = vld [vmem:[%s1794_s7 + $0x20] sm:$0xff]  ;;  %v492_v3 = vld [vmem:[%s1794_s7 + $0x28] sm:$0xff]  ;;  %v493_v6 = vld [vmem:[%s1794_s7 + $0x30] sm:$0xff] }
   0xb   :  { %1322 = vmatpush3.bf16.msra.mxu1 %v1321_v5  ;;  %1337 = vmatpush3.bf16.msra.mxu0 %v1336_v47  ;;  %v494_v7 = vld [vmem:[%s1794_s7 + $0x38] sm:$0xff]  ;;  %v831_v47 = vld [vmem:[%s1797_s11 + $0x10] sm:$0xff]  ;;  %v833_v51 = vld [vmem:[%s1797_s11 + $0x20] sm:$0xff] }
   0xc   :  { %1323 = vmatprep.subr.bf16.mxu1 %v1435_v0  ;;  %1362 = vmatprep.subr.bf16.mxu0 %v1435_v0  ;;  %v840_v62 = vld [vmem:[%s1797_s11 + $0x58] sm:$0xff] }
   0xf   :  { %1325 = vmatpush3.bf16.msra.mxu1 %v1324_v8 }
  0x10   :  { %1326 = vmatprep.subr.bf16.mxu1 %v1435_v0 }
  0x14   :  { %v1426_v9 = vpop.eup %1425 }
  0x15   :  { %v1551_v10 = vmul.f32 0.6931472, %v1426_v9  ;;  %v495_v9 = vld [vmem:[%s1794_s7 + $0x40] sm:$0xff] }
  0x17   :  { %v69_v11 = vsel %vm68_vm1, %v1551_v10, 0.0  ;;  %v76_v12 = vmul.f32 %v1551_v10, %v1551_v10 }
  0x18   :  { %v70_v13 = vrot.slane %v69_v11, 4 }
  0x19   :  { %v77_v14 = vsel %vm68_vm1, %v76_v12, 0.0  ;;  %v497_v12 = vld [vmem:[%s1794_s7 + $0x50] sm:$0xff] }
  0x1a   :  { %v71_v15 = vadd.f32 %v70_v13, %v69_v11  ;;  %v78_v16 = vrot.slane %v77_v14, 4  ;;  %v498_v13 = vld [vmem:[%s1794_s7 + $0x58] sm:$0xff] }
  0x1c   :  { %v72_v17 = vrot.slane %v71_v15, 2  ;;  %v79_v18 = vadd.f32 %v78_v16, %v77_v14  ;;  %v1354_v14 = vpack.c.bf16 %v498_v13, %v497_v12  ;;  %v500_v16 = vld [vmem:[%s1794_s7 + $0x68] sm:$0xff] }
  0x1e   :  { %v73_v19 = vadd.f32 %v72_v17, %v71_v15  ;;  %v80_v20 = vrot.slane %v79_v18, 2  ;;  %v499_v15 = vld [vmem:[%s1794_s7 + $0x60] sm:$0xff] }
  0x1f   :  { %v1357_v17 = vpack.c.bf16 %v500_v16, %v499_v15 }
  0x20   :  { %v74_v21 = vrot.slane %v73_v19, 1  ;;  %v81_v22 = vadd.f32 %v80_v20, %v79_v18  ;;  %v501_v18 = vld [vmem:[%s1794_s7 + $0x70] sm:$0xff] }
  0x22   :  { %v75_v23 = vadd.f32 %v74_v21, %v73_v19  ;;  %v82_v24 = vrot.slane %v81_v22, 1  ;;  %v502_v19 = vld [vmem:[%s1794_s7 + $0x78] sm:$0xff]  ;;  %v1057_v21 = vld [vmem:[%s1795_s6] ss:$0 sm:$0xff] }
  0x23   :  { %v1360_v20 = vpack.c.bf16 %v502_v19, %v501_v18  ;;  %v842_v18 = vld [vmem:[%s1797_s11 + $0x68] sm:$0xff] }
  0x24   :  { %1156 = vmatmul.mubr.msk.f32.vlgmr.msra.gmra.mrb[0].mxu1 %vm84_vm2, %v75_v23  ;;  %v83_v25 = vadd.f32 %v82_v24, %v81_v22 }
  0x25   :  { %1328 = vmatpush3.bf16.msra.mxu1 %v1321_v5  ;;  %1166 = vmatprep.mubr.msk.f32.mxu1 %vm1436_vm0, %v1437_v4  ;;  %v1345_v5 = vpack.c.bf16 %v492_v3, %v491_v2 }
  0x26   :  { %1329 = vmatprep.subr.bf16.mxu1 %v1435_v0 }
  0x29   :  { %1331 = vmatpush3.bf16.msra.mxu1 %v1324_v8  ;;  %v1348_v8 = vpack.c.bf16 %v494_v7, %v493_v6 }
  0x2a   :  { %1169 = vmatprep.subr.mxu1 %v1437_v4 }
  0x2c   :  { %1167 = vmatmul.mubr.msk.f32.vlgmr.msra.gmra.mrb[2].mxu1 %vm84_vm2, %v83_v25 }
  0x2d   :  { %1171 = vmatprep.mubr.msk.f32.mxu1 %vm1436_vm0, %v1437_v4  ;;  %1170 = vmatpush3.msk.msra.mxu1 %vm244_vm3, %v65_v26 }
  0x2e   :  { %1174 = vmatprep.subr.mxu1 %v1437_v4 }
  0xf7   :  { %v154_v27 = vpop.f32.mrb[0].mxu1 }
  0xf8   :  { %v1157_v28 = vpop.f32.mrb[1].mxu1  ;;  %v231_v29 = vmul.f32 0.0625, %v154_v27 }
  0xfa   :  { %v233_v31 = vmul.f32 %v231_v29, %v231_v29 }
  0xff   :  { %v227_v30 = vpop.f32.mrb[2].mxu1 }
 0x100   :  { %v232_v32 = vmul.f32 0.0625, %v227_v30  ;;  %v1168_v33 = vpop.f32.mrb[3].mxu1 }
 0x102   :  { %v234_v34 = vsub.f32 %v232_v32, %v233_v31 }
 0x104   :  { %v235_v35 = vadd.f32 1e-05, %v234_v34 }
 0x106   :  { %1427 = vrsqrt.f32 %v235_v35 }
 0x110   :  { %v1428_v37 = vpop.eup %1427 }
 0x111   :  { %v237_v38 = vmul.f32 %v1428_v37, %v66_v36 }
 0x113   :  { %1172 = vmatmul.mubr.msk.f32.vlgmr.msra.gmra.mrb[4].mxu1 %vm240_vm4, %v237_v38  ;;  %v238_v40 = vmul.f32 %v237_v38, %v231_v29 }
 0x114   :  { %1175 = vmatpush3.msk.msra.mxu1 %vm244_vm3, %v65_v26  ;;  %1176 = vmatprep.mubr.msk.f32.mxu1 %vm1436_vm0, %v1437_v4 }
 0x115   :  { %v239_v41 = vsub.f32 %v67_v39, %v238_v40  ;;  %1338 = vmatprep.subr.bf16.mxu1 %v1435_v0 }
 0x117   :  { %1177 = vmatmul.mubr.msk.f32.vlgmr.msra.gmra.mrb[6].mxu1 %vm240_vm4, %v239_v41 }
 0x118   :  { %1222 = vmatprep.mubr.msk.f32.mxu1 %vm1436_vm0, %v1437_v4  ;;  %1340 = vmatpush3.bf16.msra.mxu1 %v1339_v50 }
 0x119   :  { %1341 = vmatprep.subr.bf16.mxu1 %v1435_v0 }
 0x11c   :  { %1343 = vmatpush3.bf16.msra.mxu1 %v1342_v1 }
 0x11d   :  { %1344 = vmatprep.subr.bf16.mxu1 %v1435_v0 }
 0x120   :  { %1346 = vmatpush3.bf16.msra.mxu1 %v1345_v5 }
 0x121   :  { %1347 = vmatprep.subr.bf16.mxu1 %v1435_v0 }
 0x124   :  { %1349 = vmatpush3.bf16.msra.mxu1 %v1348_v8 }
 0x125   :  { %1350 = vmatprep.subr.bf16.mxu1 %v1435_v0 }
 0x1e6   :  { %v314_v54 = vpop.f32.mrb[4].mxu1 }
 0x1e7   :  { %v394_v55 = vrot.slane %v314_v54, %v1604_v53  ;;  %v1173_v56 = vpop.f32.mrb[5].mxu1  ;;  %v1399_v54 = vpack.c.bf16 %v834_v52, %v833_v51 }
 0x1e8   :  { %v836_v56 = vld [vmem:[%s1797_s11 + $0x38] sm:$0xff] }
 0x1e9   :  { %v395_v58 = vmul.f32 %v394_v55, %v1551_v10  ;;  %v496_v10 = vld [vmem:[%s1794_s7 + $0x48] sm:$0xff]  ;;  %v835_v55 = vld [vmem:[%s1797_s11 + $0x30] sm:$0xff] }
 0x1ea   :  { %v387_v57 = vpop.f32.mrb[6].mxu1  ;;  %v1351_v11 = vpack.c.bf16 %v496_v10, %v495_v9 }
 0x1eb   :  { %v399_v59 = vrot.slane %v387_v57, %v1604_v53  ;;  %v1178_v60 = vpop.f32.mrb[7].mxu1  ;;  %v1402_v57 = vpack.c.bf16 %v836_v56, %v835_v55 }
 0x1ec   :  { %1352 = vmatpush3.bf16.msra.mxu1 %v1351_v11 }
 0x1ed   :  { %v400_v61 = vadd.f32 %v399_v59, %v395_v58  ;;  %1353 = vmatprep.subr.bf16.mxu1 %v1435_v0  ;;  %v837_v58 = vld [vmem:[%s1797_s11 + $0x40] sm:$0xff]  ;;  %v838_v59 = vld [vmem:[%s1797_s11 + $0x48] sm:$0xff] }
 0x1ee   :  { %v1405_v60 = vpack.c.bf16 %v838_v59, %v837_v58 }
 0x1ef   :  { %1188 = vmatmul.mubr.msk.f32.vlgmr.msra.gmra.mrb[0].mxu0 %vm84_vm2, %v400_v61  ;;  %v839_v61 = vld [vmem:[%s1797_s11 + $0x50] sm:$0xff] }
 0x1f0   :  { %1364 = vmatpush3.bf16.msra.mxu0 %v1339_v50  ;;  %1257 = vmatprep.mubr.msk.f32.mxu0 %vm1436_vm0, %v1437_v4  ;;  %v1396_v50 = vpack.c.bf16 %v832_v49, %v831_v47  ;;  %v1408_v63 = vpack.c.bf16 %v840_v62, %v839_v61  ;;  %v1063_v62 = vld [vmem:[%s1804_s14] ss:$0 sm:$0xff] }
 0x1f1   :  { %1365 = vmatprep.subr.bf16.mxu0 %v1435_v0  ;;  %1355 = vmatpush3.bf16.msra.mxu1 %v1354_v14 }
 0x1f2   :  { %1356 = vmatprep.subr.bf16.mxu1 %v1435_v0 }
 0x1f4   :  { %1367 = vmatpush3.bf16.msra.mxu0 %v1342_v1 }
 0x1f5   :  { %1368 = vmatprep.subr.bf16.mxu0 %v1435_v0  ;;  %1358 = vmatpush3.bf16.msra.mxu1 %v1357_v17 }
 0x1f6   :  { %1359 = vmatprep.subr.bf16.mxu1 %v1435_v0 }
 0x1f8   :  { %1370 = vmatpush3.bf16.msra.mxu0 %v1345_v5 }
 0x1f9   :  { %1371 = vmatprep.subr.bf16.mxu0 %v1435_v0  ;;  %1361 = vmatpush3.bf16.msra.mxu1 %v1360_v20 }
 0x1fa   :  { %1386 = vmatprep.subr.bf16.mxu1 %v1435_v0 }
 0x1fc   :  { %1373 = vmatpush3.bf16.msra.mxu0 %v1348_v8 }
 0x1fd   :  { %1374 = vmatprep.subr.bf16.mxu0 %v1435_v0 }
 0x200   :  { %1376 = vmatpush3.bf16.msra.mxu0 %v1351_v11  ;;  %v505_v11 = vld [vmem:[%s1798_s9] sm:$0x1] }
 0x201   :  { %1377 = vmatprep.subr.bf16.mxu0 %v1435_v0 }
 0x204   :  { %1379 = vmatpush3.bf16.msra.mxu0 %v1354_v14  ;;  %v506_v14 = vld [vmem:[%s1799_s10] sm:$0x1] }
 0x205   :  { %1380 = vmatprep.subr.bf16.mxu0 %v1435_v0 }
 0x208   :  { %1382 = vmatpush3.bf16.msra.mxu0 %v1357_v17  ;;  %v841_v17 = vld [vmem:[%s1797_s11 + $0x60] sm:$0xff] }
 0x209   :  { %1383 = vmatprep.subr.bf16.mxu0 %v1435_v0  ;;  %v1411_v19 = vpack.c.bf16 %v842_v18, %v841_v17 }
 0x20c   :  { %1385 = vmatpush3.bf16.msra.mxu0 %v1360_v20  ;;  %v843_v20 = vld [vmem:[%s1797_s11 + $0x70] sm:$0xff] }
 0x20d   :  { %1392 = vmatprep.subr.bf16.mxu0 %v1435_v0 }
 0x2c2   :  { %v481_v22 = vpop.f32.mrb[0].mxu0 }
 0x2c3   :  { %v482_v23 = vadd.f32 %v1057_v21, %v481_v22  ;;  %v1189_v24 = vpop.f32.mrb[1].mxu0 }
 0x2c5   :  { %v485_v25 = vmul.f32 1.442695, %v482_v23 }
 0x2c7   :  { %1429 = vpow2.f32 %v485_v25 }
 0x2d1   :  { %v1672_v26 = vpop.eup %1429 }
 0x2d2   :  { %v508_v27 = vsel %vm507_vm5, %v1672_v26, 0.0  ;;  %v515_v28 = vmul.f32 %v1672_v26, %v1672_v26 }
 0x2d3   :  { %v509_v29 = vrot.slane %v508_v27, 4 }
 0x2d4   :  { %v516_v30 = vsel %vm507_vm5, %v515_v28, 0.0 }
 0x2d5   :  { %v510_v31 = vadd.f32 %v509_v29, %v508_v27  ;;  %v517_v32 = vrot.slane %v516_v30, 4 }
 0x2d7   :  { %v511_v33 = vrot.slane %v510_v31, 2  ;;  %v518_v34 = vadd.f32 %v517_v32, %v516_v30  ;;  %v962_v32 = vld [vmem:[%s1800_s15 + $0x8] sm:$0xff] }
 0x2d9   :  { %v512_v35 = vadd.f32 %v511_v33, %v510_v31  ;;  %v519_v36 = vrot.slane %v518_v34, 2  ;;  %v961_v31 = vld [vmem:[%s1800_s15] sm:$0xff] }
 0x2da   :  { %v1417_v33 = vpack.c.bf16 %v962_v32, %v961_v31 }
 0x2db   :  { %v513_v37 = vrot.slane %v512_v35, 1  ;;  %v520_v38 = vadd.f32 %v519_v36, %v518_v34  ;;  %v1061_v36 = vld [vmem:[%s1802_s12] ss:$0 sm:$0xff] }
 0x2dd   :  { %v514_v39 = vadd.f32 %v513_v37, %v512_v35  ;;  %v521_v40 = vrot.slane %v520_v38, 1  ;;  %v22_v35 = vstv %s1801_s16 }
 0x2de   :  { %23 = vst [vmem:[#allocation2] sm:$0x1] %v22_v35 }
 0x2df   :  { %1223 = vmatmul.mubr.f32.vlgmr.msra.gmra.mrb[8].mxu1 %v514_v39  ;;  %v522_v41 = vadd.f32 %v521_v40, %v520_v38 }
 0x2e0   :  { %1264 = vmatprep.mubr.msk.f32.mxu1 %vm1436_vm0, %v1437_v4  ;;  %1388 = vmatpush3.bf16.msra.mxu1 %v1387_v44 }
 0x2e1   :  { %1258 = vmatmul.mubr.f32.vlgmr.msra.gmra.mrb[2].mxu0 %v522_v41  ;;  %1389 = vmatprep.subr.bf16.mxu1 %v1435_v0 }
 0x2e2   :  { %1306 = vmatprep.mubr.msk.f32.mxu0 %vm1436_vm0, %v1437_v4  ;;  %1394 = vmatpush3.bf16.msra.mxu0 %v1393_v48 }
 0x2e3   :  { %1395 = vmatprep.subr.bf16.mxu0 %v1435_v0 }
 0x2e6   :  { %1397 = vmatpush3.bf16.msra.mxu0 %v1396_v50 }
 0x2e7   :  { %1398 = vmatprep.subr.bf16.mxu0 %v1435_v0 }
 0x2ea   :  { %1400 = vmatpush3.bf16.msra.mxu0 %v1399_v54 }
 0x2eb   :  { %1401 = vmatprep.subr.bf16.mxu0 %v1435_v0 }
 0x2ee   :  { %1403 = vmatpush3.bf16.msra.mxu0 %v1402_v57 }
 0x2ef   :  { %1404 = vmatprep.subr.bf16.mxu0 %v1435_v0 }
 0x2f2   :  { %1406 = vmatpush3.bf16.msra.mxu0 %v1405_v60  ;;  %v1062_v60 = vld [vmem:[%s1803_s13] ss:$0 sm:$0xff] }
 0x2f3   :  { %1407 = vmatprep.subr.bf16.mxu0 %v1435_v0 }
 0x2f6   :  { %1409 = vmatpush3.bf16.msra.mxu0 %v1408_v63 }
 0x2f7   :  { %1410 = vmatprep.subr.bf16.mxu0 %v1435_v0 }
 0x2fa   :  { %1412 = vmatpush3.bf16.msra.mxu0 %v1411_v19 }
 0x2fb   :  { %1413 = vmatprep.subr.bf16.mxu0 %v1435_v0 }
 0x3b2   :  { %v589_v1 = vpop.f32.mrb[8].mxu1 }
 0x3b3   :  { %v663_v2 = vmul.f32 0.0625, %v589_v1  ;;  %v1224_v3 = vpop.f32.mrb[9].mxu1 }
 0x3b4   :  { %v659_v5 = vpop.f32.mrb[2].mxu0  ;;  %v1064_v3 = vld [vmem:[#allocation2] ss:$0 sm:$0xff] }
 0x3b5   :  { %v665_v6 = vmul.f32 %v663_v2, %v663_v2  ;;  %v664_v7 = vmul.f32 0.0625, %v659_v5  ;;  %v1259_v8 = vpop.f32.mrb[3].mxu0 }
 0x3b7   :  { %v666_v9 = vsub.f32 %v664_v7, %v665_v6 }
 0x3b9   :  { %v667_v10 = vadd.f32 1e-05, %v666_v9 }
 0x3bb   :  { %1431 = vrsqrt.f32 %v667_v10 }
 0x3c5   :  { %v1432_v12 = vpop.eup %1431 }
 0x3c6   :  { %v669_v13 = vmul.f32 %v1432_v12, %v505_v11 }
 0x3c8   :  { %1265 = vmatmul.mubr.msk.f32.vlgmr.msra.gmra.mrb[10].mxu1 %vm672_vm6, %v669_v13  ;;  %v670_v15 = vmul.f32 %v669_v13, %v663_v2 }
 0x3c9   :  { %1391 = vmatpush3.bf16.msra.mxu1 %v1387_v44  ;;  %1271 = vmatprep.mubr.msk.f32.mxu1 %vm1436_vm0, %v1437_v4 }
 0x3ca   :  { %v671_v16 = vsub.f32 %v506_v14, %v670_v15  ;;  %1416 = vmatprep.subr.bf16.mxu1 %v1435_v0 }
 0x3cc   :  { %1272 = vmatmul.mubr.msk.f32.vlgmr.msra.gmra.mrb[12].mxu1 %vm672_vm6, %v671_v16 }
 0x3cd   :  { %1317 = vmatprep.mubr.msk.f32.mxu1 %vm1436_vm0, %v1437_v4  ;;  %v844_v4 = vld [vmem:[%s1797_s11 + $0x78] sm:$0xff]  ;;  %1418 = vmatpush3.bf16.msra.mxu1 %v1417_v33 }
 0x3ce   :  { %v1414_v21 = vpack.c.bf16 %v844_v4, %v843_v20  ;;  %1419 = vmatprep.subr.bf16.mxu1 %v1435_v0 }
 0x3d0   :  { %1415 = vmatpush3.bf16.msra.mxu0 %v1414_v21 }
 0x49b   :  { %v742_v22 = vpop.f32.mrb[10].mxu1 }
 0x49c   :  { %v822_v23 = vrot.slane %v742_v22, %v1604_v53  ;;  %v1266_v24 = vpop.f32.mrb[11].mxu1 }
 0x49e   :  { %v823_v27 = vmul.f32 %v1672_v26, %v822_v23  ;;  %v963_v26 = vld [vmem:[%s1800_s15 + $0x10] sm:$0xff] }
 0x49f   :  { %v815_v25 = vpop.f32.mrb[12].mxu1 }
 0x4a0   :  { %v827_v28 = vrot.slane %v815_v25, %v1604_v53  ;;  %v1273_v29 = vpop.f32.mrb[13].mxu1  ;;  %v964_v53 = vld [vmem:[%s1800_s15 + $0x18] sm:$0xff] }
 0x4a1   :  { %v1420_v34 = vpack.c.bf16 %v964_v53, %v963_v26 }
 0x4a2   :  { %v828_v30 = vadd.f32 %v827_v28, %v823_v27 }
 0x4a3   :  { %1421 = vmatpush3.bf16.msra.mxu1 %v1420_v34 }
 0x4a4   :  { %1307 = vmatmul.mubr.f32.vlgmr.msra.gmra.mrb[4].mxu0 %v828_v30 }
 0x577   :  { %v918_v0 = vpop.f32.mrb[4].mxu0 }
 0x578   :  { %v919_v37 = vadd.f32 %v1061_v36, %v918_v0  ;;  %v1308_v38 = vpop.f32.mrb[5].mxu0 }
 0x57a   :  { %v922_v39 = vsel %vm68_vm1, %v919_v37, 0.0 }
 0x57b   :  { %v923_v40 = vrot.slane %v922_v39, 4 }
 0x57d   :  { %v924_v41 = vadd.f32 %v923_v40, %v922_v39 }
 0x57f   :  { %v925_v42 = vrot.slane %v924_v41, 2 }
 0x581   :  { %v926_v43 = vadd.f32 %v925_v42, %v924_v41 }
 0x583   :  { %v927_v44 = vrot.slane %v926_v43, 1 }
 0x585   :  { %v928_v45 = vadd.f32 %v927_v44, %v926_v43 }
 0x587   :  { %v930_v46 = vmul.f32 0.5, %v928_v45 }
 0x589   :  { %v931_v47 = vsub.f32 %v919_v37, %v930_v46 }
 0x58b   :  { %v932_v48 = vmul.f32 %v931_v47, %v931_v47 }
 0x58d   :  { %v933_v49 = vsel %vm68_vm1, %v932_v48, 0.0 }
 0x58e   :  { %v934_v50 = vrot.slane %v933_v49, 4 }
 0x590   :  { %v935_v51 = vadd.f32 %v934_v50, %v933_v49 }
 0x592   :  { %v936_v52 = vrot.slane %v935_v51, 2 }
 0x594   :  { %v937_v54 = vadd.f32 %v936_v52, %v935_v51 }
 0x596   :  { %v938_v55 = vrot.slane %v937_v54, 1 }
 0x598   :  { %v939_v56 = vadd.f32 %v938_v55, %v937_v54 }
 0x59a   :  { %v940_v57 = vmul.f32 0.5, %v939_v56 }
 0x59c   :  { %v941_v58 = vadd.f32 1e-05, %v940_v57 }
 0x59e   :  { %1433 = vrsqrt.f32 %v941_v58 }
 0x5a8   :  { %v1434_v59 = vpop.eup %1433 }
 0x5a9   :  { %v943_v61 = vmul.f32 %v1434_v59, %v931_v47 }
 0x5ab   :  { %v951_v63 = vmul.f32 %v1062_v60, %v943_v61 }
 0x5ad   :  { %v959_v1 = vadd.f32 %v1063_v62, %v951_v63 }
 0x5af   :  { %v960_v2 = vmax.f32 %v959_v1, 0.0 }
 0x5b1   :  { %1318 = vmatmul.mubr.msk.f32.vlgmr.msra.gmra.mrb[14].mxu1 %vm84_vm2, %v960_v2 }
 0x684   :  { %v1041_v5 = vpop.f32.mrb[14].mxu1 }
 0x685   :  { %v1042_v6 = vadd.f32 %v1064_v3, %v1041_v5  ;;  %v1319_v7 = vpop.f32.mrb[15].mxu1 }
 0x687   :  { %1046 = vst.msk [vmem:[%s1805_s17] sm:$0x3] %vm1045_vm7, %v1042_v6 }

</bundles_post_ra>
